<compile_context>
chip_gen: v7x
topology: tpu7x:2x2x1
jax: 0.10.0
libtpu: 0.0.40
codegen_flags: <defaults>
</compile_context>

<pallas_src>
import jax
import jax.numpy as jnp
from jax.experimental import pallas as pl
from jax.experimental.pallas import tpu as pltpu


def lstm_kernel(x_ref, wih_ref, whh_ref, b_ref, wlin_ref, blin_ref, out_ref,
                xg_ref):
    """LSTM forward + linear head for one batch tile (all refs in VMEM).

    x_ref:    (T, B, D)      bfloat16   time-major input
    wih_ref:  (D, 4*HP)      bfloat16   W_ih^T, gate order (i,f,o,g), padded to HP
    whh_ref:  (HP, 4*HP)     bfloat16   W_hh^T, same layout, rows padded to HP
    b_ref:    (1, 4*HP)      float32    b_ih + b_hh, same layout
    wlin_ref: (1, HP)        float32    linear weight, lane-major, padded
    blin_ref: (1, O)         float32
    out_ref:  (B, O)         float32
    xg_ref:   (T, B, 4*HP)   float32    VMEM scratch for the input projection
    """
    T, B, D = x_ref.shape
    HP = whh_ref.shape[0]
    G = 4 * HP

    # --- Hoisted input projection for all timesteps (single MXU pass), with the
    #     bias folded in once (outside the serial recurrence). ---------------
    x2d = x_ref[...].reshape(T * B, D)                                    # bf16
    xg = jnp.dot(x2d, wih_ref[...], preferred_element_type=jnp.float32)  # (T*B, 4HP)
    xg = xg + b_ref[...]                                                  # one broadcast
    xg_ref[...] = xg.reshape(T, B, G)                                     # stage in VMEM

    whh = whh_ref[...]                                                    # (HP, 4HP) bf16

    def act(gates):
        # Gate layout (i, f, o, g): one sigmoid on the first 3*HP lanes,
        # one tanh on the last HP lanes. All slice offsets are 128-multiples.
        s = jax.nn.sigmoid(gates[:, :3 * HP])
        i = s[:, 0 * HP:1 * HP]
        f = s[:, 1 * HP:2 * HP]
        o = s[:, 2 * HP:3 * HP]
        g = jnp.tanh(gates[:, 3 * HP:4 * HP])
        return i, f, o, g

    # --- Peeled t = 0: h = c = 0, so no recurrent matmul and c = i * g. -----
    i, f, o, g = act(xg_ref[0])
    c = i * g
    h = o * jnp.tanh(c)

    # --- Remaining T-1 steps, fully unrolled (static leading-axis reads). ---
    for t in range(1, T):
        gates = xg_ref[t] + jnp.dot(h.astype(jnp.bfloat16), whh,
                                    preferred_element_type=jnp.float32)   # (B, 4HP) f32
        i, f, o, g = act(gates)
        c = f * c + i * g
        h = o * jnp.tanh(c)

    # --- O = 1 head: VPU multiply + cross-lane reduce (no N=1 MXU pass).
    #     Padded h lanes are zero and the matching wlin lanes are zero, so the
    #     result equals the unpadded model. -----------------------------------
    out_ref[...] = (
        jnp.sum(h * wlin_ref[...], axis=-1, keepdims=True) + blin_ref[...]
    )


def lstm_model_forward(x, w_ih_t, w_hh_t, b, w_lin_t, b_lin, *, batch_tile=None):
    """x: (B, T, D) f32. Weights pre-transposed, unpadded (see __main__)."""
    B, T, D = x.shape
    H = w_hh_t.shape[0]
    O = w_lin_t.shape[1]
    assert O == 1, "head is specialized for output_size == 1 (per module spec)"
    HP = ((H + 127) // 128) * 128            # pad each gate block to full lanes

    # Reorder PyTorch gate blocks (i, f, g, o) -> kernel layout (i, f, o, g),
    # padding each gate's H columns to HP lanes.
    GATE_ORDER = (0, 1, 3, 2)

    def pad_gate_cols(w):
        parts = []
        for k in GATE_ORDER:
            p = w[..., k * H:(k + 1) * H]
            pad = [(0, 0)] * (w.ndim - 1) + [(0, HP - H)]
            parts.append(jnp.pad(p, pad))
        return jnp.concatenate(parts, axis=-1)

    wih_p = pad_gate_cols(w_ih_t).astype(jnp.bfloat16)                    # (D, 4HP)
    whh_p = jnp.pad(pad_gate_cols(w_hh_t),
                    ((0, HP - H), (0, 0))).astype(jnp.bfloat16)           # (HP, 4HP)
    b_p = pad_gate_cols(b).astype(jnp.float32)                            # (1, 4HP)
    wlin_p = jnp.pad(w_lin_t.T, ((0, 0), (0, HP - H))).astype(jnp.float32)  # (1, HP)
    blin_p = b_lin.astype(jnp.float32)                                    # (1, O)

    # Time-major bf16 input (halves the input DMA; MXU operand dtype).
    x_tbd = jnp.transpose(x, (1, 0, 2)).astype(jnp.bfloat16)              # (T, B, D)

    # Batch grid: default is one block (best for the tiny-B latency-bound case;
    # never duplicates the serial recurrence). Sharding across v7x TensorCores
    # is only honored when the per-core batch is a multiple of 8 and divides B.
    if batch_tile is None or batch_tile >= B:
        batch_tile = B
    else:
        assert B % batch_tile == 0 and batch_tile % 8 == 0, (
            "batch_tile must divide B and be a multiple of 8")
    grid = (B // batch_tile,)

    return pl.pallas_call(
        lstm_kernel,
        out_shape=jax.ShapeDtypeStruct((B, O), jnp.float32),
        grid_spec=pltpu.PrefetchScalarGridSpec(
            num_scalar_prefetch=0,
            grid=grid,
            in_specs=[
                pl.BlockSpec((T, batch_tile, D), lambda i: (0, i, 0)),
                pl.BlockSpec((D, 4 * HP), lambda i: (0, 0)),
                pl.BlockSpec((HP, 4 * HP), lambda i: (0, 0)),
                pl.BlockSpec((1, 4 * HP), lambda i: (0, 0)),
                pl.BlockSpec((1, HP), lambda i: (0, 0)),
                pl.BlockSpec((1, O), lambda i: (0, 0)),
            ],
            out_specs=pl.BlockSpec((batch_tile, O), lambda i: (i, 0)),
            scratch_shapes=[pltpu.VMEM((T, batch_tile, 4 * HP), jnp.float32)],
        ),
        compiler_params=pltpu.CompilerParams(
            dimension_semantics=("parallel",)),
    )(x_tbd, wih_p, whh_p, b_p, wlin_p, blin_p)


def lstm_model_reference(x, w_ih_t, w_hh_t, b, w_lin_t, b_lin):
    """Pure-JAX f32 reference mirroring torch.nn.LSTM(batch_first=True) + Linear."""
    B, T, D = x.shape
    H = w_hh_t.shape[0]
    h = jnp.zeros((B, H), jnp.float32)
    c = jnp.zeros((B, H), jnp.float32)
    for t in range(T):
        gates = x[:, t, :] @ w_ih_t + h @ w_hh_t + b
        i = jax.nn.sigmoid(gates[:, 0 * H:1 * H])
        f = jax.nn.sigmoid(gates[:, 1 * H:2 * H])
        g = jnp.tanh(gates[:, 2 * H:3 * H])
        o = jax.nn.sigmoid(gates[:, 3 * H:4 * H])
        c = f * c + i * g
        h = o * jnp.tanh(c)
    return h @ w_lin_t + b_lin


if __name__ == "__main__":
    # Shapes consistent with the module: batch=2, seq=8, input_size=6,
    # hidden_size=64, num_layers=1, output_size=1.
    B, T, D, H, O = 2, 8, 6, 64, 1

    key = jax.random.PRNGKey(0)
    kx, k1, k2, k3, k4, k5, k6 = jax.random.split(key, 7)
    scale = 1.0 / jnp.sqrt(jnp.float32(H))

    x = jax.random.normal(kx, (B, T, D), jnp.float32)

    # PyTorch nn.LSTM params: weight_ih (4H, D), weight_hh (4H, H), biases (4H,).
    # Stored here pre-transposed for the kernel wrapper.
    w_ih_t = jax.random.uniform(k1, (D, 4 * H), jnp.float32, -scale, scale)
    w_hh_t = jax.random.uniform(k2, (H, 4 * H), jnp.float32, -scale, scale)
    b_ih = jax.random.uniform(k3, (4 * H,), jnp.float32, -scale, scale)
    b_hh = jax.random.uniform(k4, (4 * H,), jnp.float32, -scale, scale)
    b = (b_ih + b_hh).reshape(1, 4 * H)

    # nn.Linear(hidden_size, output_size): weight (O, H), bias (O,).
    w_lin_t = jax.random.uniform(k5, (H, O), jnp.float32, -scale, scale)
    b_lin = jax.random.uniform(k6, (1, O), jnp.float32, -scale, scale)

    out = lstm_model_forward(x, w_ih_t, w_hh_t, b, w_lin_t, b_lin)
    out = jax.block_until_ready(out)

    ref = lstm_model_reference(x, w_ih_t, w_hh_t, b, w_lin_t, b_lin)
    assert out.shape == (B, O)
    # bf16 MXU operands (f32 accumulation) vs. pure-f32 reference -> relaxed tol.
    assert jnp.allclose(out, ref, atol=2e-2, rtol=2e-2), (out, ref)

    print("KERNEL_OK")
</pallas_src>

<mosaic_0001>
module attributes {stable_mosaic.version = 11 : i64} {
  func.func @lstm_kernel(%arg0: i32, %arg1: memref<8x2x6xbf16, #tpu.memory_space<vmem>>, %arg2: memref<6x512xbf16, #tpu.memory_space<vmem>>, %arg3: memref<128x512xbf16, #tpu.memory_space<vmem>>, %arg4: memref<1x512xf32, #tpu.memory_space<vmem>>, %arg5: memref<1x128xf32, #tpu.memory_space<vmem>>, %arg6: memref<1x1xf32, #tpu.memory_space<vmem>>, %arg7: memref<2x1xf32, #tpu.memory_space<vmem>>, %arg8: memref<8x2x512xf32, #tpu.memory_space<vmem>>) attributes {dimension_semantics = [#tpu.dimension_semantics<parallel>], iteration_bounds = array<i64: 1>, scalar_prefetch = 0 : i64, scratch_operands = 1 : i64, tpu.core_type = #tpu.core_type<tc>, window_params = [{transform_indices = @transform_0, window_bounds = array<i64: 8, 2, 6>}, {pipeline_mode = #tpu.pipeline_mode<synchronous>, transform_indices = @transform_1, window_bounds = array<i64: 6, 512>}, {pipeline_mode = #tpu.pipeline_mode<synchronous>, transform_indices = @transform_2, window_bounds = array<i64: 128, 512>}, {pipeline_mode = #tpu.pipeline_mode<synchronous>, transform_indices = @transform_3, window_bounds = array<i64: 1, 512>}, {pipeline_mode = #tpu.pipeline_mode<synchronous>, transform_indices = @transform_4, window_bounds = array<i64: 1, 128>}, {pipeline_mode = #tpu.pipeline_mode<synchronous>, transform_indices = @transform_5, window_bounds = array<i64: 1, 1>}, {transform_indices = @transform_6, window_bounds = array<i64: 2, 1>}]} {
    %c0 = arith.constant 0 : index
    %c0_0 = arith.constant 0 : index
    %c0_1 = arith.constant 0 : index
    %0 = vector.load %arg1[%c0, %c0_0, %c0_1] : memref<8x2x6xbf16, #tpu.memory_space<vmem>>, vector<8x2x6xbf16>
    %1 = vector.shape_cast %0 : vector<8x2x6xbf16> to vector<16x6xbf16>
    %c0_2 = arith.constant 0 : index
    %c0_3 = arith.constant 0 : index
    %2 = vector.load %arg2[%c0_2, %c0_3] : memref<6x512xbf16, #tpu.memory_space<vmem>>, vector<6x512xbf16>
    %cst = arith.constant dense<0.000000e+00> : vector<16x512xf32>
    %3 = tpu.matmul %1, %2, %cst {dimension_numbers = #tpu.dot_dimension_numbers<[1], [0], [0], [1], [0, 0, 1, 1], [], []>} : vector<16x6xbf16>, vector<6x512xbf16>, vector<16x512xf32> -> vector<16x512xf32>
    %c0_4 = arith.constant 0 : index
    %c0_5 = arith.constant 0 : index
    %4 = vector.load %arg4[%c0_4, %c0_5] : memref<1x512xf32, #tpu.memory_space<vmem>>, vector<1x512xf32>
    %5 = vector.broadcast %4 : vector<1x512xf32> to vector<16x512xf32>
    %6 = arith.addf %3, %5 : vector<16x512xf32>
    %7 = vector.shape_cast %6 : vector<16x512xf32> to vector<8x2x512xf32>
    %c0_6 = arith.constant 0 : index
    %c0_7 = arith.constant 0 : index
    %c0_8 = arith.constant 0 : index
    %8 = vector.load %arg8[%c0_6, %c0_7, %c0_8] : memref<8x2x512xf32, #tpu.memory_space<vmem>>, vector<8x2x512xf32>
    tpu.vector_store %arg8[%c0_6, %c0_7, %c0_8], %7 {strides = array<i32>} : memref<8x2x512xf32, #tpu.memory_space<vmem>>, vector<8x2x512xf32>,
    %c0_9 = arith.constant 0 : index
    %c0_10 = arith.constant 0 : index
    %9 = vector.load %arg3[%c0_9, %c0_10] : memref<128x512xbf16, #tpu.memory_space<vmem>>, vector<128x512xbf16>
    %c0_11 = arith.constant 0 : index
    %c0_12 = arith.constant 0 : index
    %c0_13 = arith.constant 0 : index
    %10 = vector.load %arg8[%c0_11, %c0_12, %c0_13] : memref<8x2x512xf32, #tpu.memory_space<vmem>>, vector<1x2x512xf32>
    %11 = vector.shape_cast %10 : vector<1x2x512xf32> to vector<2x512xf32>
    %12 = vector.extract_strided_slice %11 {offsets = [0, 0], sizes = [2, 384], strides = [1, 1]} : vector<2x512xf32> to vector<2x384xf32>
    %13 = arith.negf %12 : vector<2x384xf32>
    %14 = math.exp %13 : vector<2x384xf32>
    %cst_14 = arith.constant 1.000000e+00 : f32
    %15 = vector.broadcast %cst_14 : f32 to vector<2x384xf32>
    %16 = arith.addf %15, %14 : vector<2x384xf32>
    %17 = arith.divf %15, %16 : vector<2x384xf32>
    %18 = vector.extract_strided_slice %17 {offsets = [0, 0], sizes = [2, 128], strides = [1, 1]} : vector<2x384xf32> to vector<2x128xf32>
    %19 = vector.extract_strided_slice %17 {offsets = [0, 256], sizes = [2, 128], strides = [1, 1]} : vector<2x384xf32> to vector<2x128xf32>
    %20 = vector.extract_strided_slice %11 {offsets = [0, 384], sizes = [2, 128], strides = [1, 1]} : vector<2x512xf32> to vector<2x128xf32>
    %21 = math.tanh %20 : vector<2x128xf32>
    %22 = arith.mulf %18, %21 : vector<2x128xf32>
    %23 = math.tanh %22 : vector<2x128xf32>
    %24 = arith.mulf %19, %23 : vector<2x128xf32>
    %c1 = arith.constant 1 : index
    %c0_15 = arith.constant 0 : index
    %c0_16 = arith.constant 0 : index
    %25 = vector.load %arg8[%c1, %c0_15, %c0_16] : memref<8x2x512xf32, #tpu.memory_space<vmem>>, vector<1x2x512xf32>
    %26 = vector.shape_cast %25 : vector<1x2x512xf32> to vector<2x512xf32>
    %27 = arith.truncf %24 : vector<2x128xf32> to vector<2x128xbf16>
    %cst_17 = arith.constant dense<0.000000e+00> : vector<2x512xf32>
    %28 = tpu.matmul %27, %9, %cst_17 {dimension_numbers = #tpu.dot_dimension_numbers<[1], [0], [0], [1], [0, 0, 1, 1], [], []>} : vector<2x128xbf16>, vector<128x512xbf16>, vector<2x512xf32> -> vector<2x512xf32>
    %29 = arith.addf %26, %28 : vector<2x512xf32>
    %30 = vector.extract_strided_slice %29 {offsets = [0, 0], sizes = [2, 384], strides = [1, 1]} : vector<2x512xf32> to vector<2x384xf32>
    %31 = arith.negf %30 : vector<2x384xf32>
    %32 = math.exp %31 : vector<2x384xf32>
    %cst_18 = arith.constant 1.000000e+00 : f32
    %33 = vector.broadcast %cst_18 : f32 to vector<2x384xf32>
    %34 = arith.addf %33, %32 : vector<2x384xf32>
    %35 = arith.divf %33, %34 : vector<2x384xf32>
    %36 = vector.extract_strided_slice %35 {offsets = [0, 0], sizes = [2, 128], strides = [1, 1]} : vector<2x384xf32> to vector<2x128xf32>
    %37 = vector.extract_strided_slice %35 {offsets = [0, 128], sizes = [2, 128], strides = [1, 1]} : vector<2x384xf32> to vector<2x128xf32>
    %38 = vector.extract_strided_slice %35 {offsets = [0, 256], sizes = [2, 128], strides = [1, 1]} : vector<2x384xf32> to vector<2x128xf32>
    %39 = vector.extract_strided_slice %29 {offsets = [0, 384], sizes = [2, 128], strides = [1, 1]} : vector<2x512xf32> to vector<2x128xf32>
    %40 = math.tanh %39 : vector<2x128xf32>
    %41 = arith.mulf %37, %22 : vector<2x128xf32>
    %42 = arith.mulf %36, %40 : vector<2x128xf32>
    %43 = arith.addf %41, %42 : vector<2x128xf32>
    %44 = math.tanh %43 : vector<2x128xf32>
    %45 = arith.mulf %38, %44 : vector<2x128xf32>
    %c2 = arith.constant 2 : index
    %c0_19 = arith.constant 0 : index
    %c0_20 = arith.constant 0 : index
    %46 = vector.load %arg8[%c2, %c0_19, %c0_20] : memref<8x2x512xf32, #tpu.memory_space<vmem>>, vector<1x2x512xf32>
    %47 = vector.shape_cast %46 : vector<1x2x512xf32> to vector<2x512xf32>
    %48 = arith.truncf %45 : vector<2x128xf32> to vector<2x128xbf16>
    %cst_21 = arith.constant dense<0.000000e+00> : vector<2x512xf32>
    %49 = tpu.matmul %48, %9, %cst_21 {dimension_numbers = #tpu.dot_dimension_numbers<[1], [0], [0], [1], [0, 0, 1, 1], [], []>} : vector<2x128xbf16>, vector<128x512xbf16>, vector<2x512xf32> -> vector<2x512xf32>
    %50 = arith.addf %47, %49 : vector<2x512xf32>
    %51 = vector.extract_strided_slice %50 {offsets = [0, 0], sizes = [2, 384], strides = [1, 1]} : vector<2x512xf32> to vector<2x384xf32>
    %52 = arith.negf %51 : vector<2x384xf32>
    %53 = math.exp %52 : vector<2x384xf32>
    %cst_22 = arith.constant 1.000000e+00 : f32
    %54 = vector.broadcast %cst_22 : f32 to vector<2x384xf32>
    %55 = arith.addf %54, %53 : vector<2x384xf32>
    %56 = arith.divf %54, %55 : vector<2x384xf32>
    %57 = vector.extract_strided_slice %56 {offsets = [0, 0], sizes = [2, 128], strides = [1, 1]} : vector<2x384xf32> to vector<2x128xf32>
    %58 = vector.extract_strided_slice %56 {offsets = [0, 128], sizes = [2, 128], strides = [1, 1]} : vector<2x384xf32> to vector<2x128xf32>
    %59 = vector.extract_strided_slice %56 {offsets = [0, 256], sizes = [2, 128], strides = [1, 1]} : vector<2x384xf32> to vector<2x128xf32>
    %60 = vector.extract_strided_slice %50 {offsets = [0, 384], sizes = [2, 128], strides = [1, 1]} : vector<2x512xf32> to vector<2x128xf32>
    %61 = math.tanh %60 : vector<2x128xf32>
    %62 = arith.mulf %58, %43 : vector<2x128xf32>
    %63 = arith.mulf %57, %61 : vector<2x128xf32>
    %64 = arith.addf %62, %63 : vector<2x128xf32>
    %65 = math.tanh %64 : vector<2x128xf32>
    %66 = arith.mulf %59, %65 : vector<2x128xf32>
    %c3 = arith.constant 3 : index
    %c0_23 = arith.constant 0 : index
    %c0_24 = arith.constant 0 : index
    %67 = vector.load %arg8[%c3, %c0_23, %c0_24] : memref<8x2x512xf32, #tpu.memory_space<vmem>>, vector<1x2x512xf32>
    %68 = vector.shape_cast %67 : vector<1x2x512xf32> to vector<2x512xf32>
    %69 = arith.truncf %66 : vector<2x128xf32> to vector<2x128xbf16>
    %cst_25 = arith.constant dense<0.000000e+00> : vector<2x512xf32>
    %70 = tpu.matmul %69, %9, %cst_25 {dimension_numbers = #tpu.dot_dimension_numbers<[1], [0], [0], [1], [0, 0, 1, 1], [], []>} : vector<2x128xbf16>, vector<128x512xbf16>, vector<2x512xf32> -> vector<2x512xf32>
    %71 = arith.addf %68, %70 : vector<2x512xf32>
    %72 = vector.extract_strided_slice %71 {offsets = [0, 0], sizes = [2, 384], strides = [1, 1]} : vector<2x512xf32> to vector<2x384xf32>
    %73 = arith.negf %72 : vector<2x384xf32>
    %74 = math.exp %73 : vector<2x384xf32>
    %cst_26 = arith.constant 1.000000e+00 : f32
    %75 = vector.broadcast %cst_26 : f32 to vector<2x384xf32>
    %76 = arith.addf %75, %74 : vector<2x384xf32>
    %77 = arith.divf %75, %76 : vector<2x384xf32>
    %78 = vector.extract_strided_slice %77 {offsets = [0, 0], sizes = [2, 128], strides = [1, 1]} : vector<2x384xf32> to vector<2x128xf32>
    %79 = vector.extract_strided_slice %77 {offsets = [0, 128], sizes = [2, 128], strides = [1, 1]} : vector<2x384xf32> to vector<2x128xf32>
    %80 = vector.extract_strided_slice %77 {offsets = [0, 256], sizes = [2, 128], strides = [1, 1]} : vector<2x384xf32> to vector<2x128xf32>
    %81 = vector.extract_strided_slice %71 {offsets = [0, 384], sizes = [2, 128], strides = [1, 1]} : vector<2x512xf32> to vector<2x128xf32>
    %82 = math.tanh %81 : vector<2x128xf32>
    %83 = arith.mulf %79, %64 : vector<2x128xf32>
    %84 = arith.mulf %78, %82 : vector<2x128xf32>
    %85 = arith.addf %83, %84 : vector<2x128xf32>
    %86 = math.tanh %85 : vector<2x128xf32>
    %87 = arith.mulf %80, %86 : vector<2x128xf32>
    %c4 = arith.constant 4 : index
    %c0_27 = arith.constant 0 : index
    %c0_28 = arith.constant 0 : index
    %88 = vector.load %arg8[%c4, %c0_27, %c0_28] : memref<8x2x512xf32, #tpu.memory_space<vmem>>, vector<1x2x512xf32>
    %89 = vector.shape_cast %88 : vector<1x2x512xf32> to vector<2x512xf32>
    %90 = arith.truncf %87 : vector<2x128xf32> to vector<2x128xbf16>
    %cst_29 = arith.constant dense<0.000000e+00> : vector<2x512xf32>
    %91 = tpu.matmul %90, %9, %cst_29 {dimension_numbers = #tpu.dot_dimension_numbers<[1], [0], [0], [1], [0, 0, 1, 1], [], []>} : vector<2x128xbf16>, vector<128x512xbf16>, vector<2x512xf32> -> vector<2x512xf32>
    %92 = arith.addf %89, %91 : vector<2x512xf32>
    %93 = vector.extract_strided_slice %92 {offsets = [0, 0], sizes = [2, 384], strides = [1, 1]} : vector<2x512xf32> to vector<2x384xf32>
    %94 = arith.negf %93 : vector<2x384xf32>
    %95 = math.exp %94 : vector<2x384xf32>
    %cst_30 = arith.constant 1.000000e+00 : f32
    %96 = vector.broadcast %cst_30 : f32 to vector<2x384xf32>
    %97 = arith.addf %96, %95 : vector<2x384xf32>
    %98 = arith.divf %96, %97 : vector<2x384xf32>
    %99 = vector.extract_strided_slice %98 {offsets = [0, 0], sizes = [2, 128], strides = [1, 1]} : vector<2x384xf32> to vector<2x128xf32>
    %100 = vector.extract_strided_slice %98 {offsets = [0, 128], sizes = [2, 128], strides = [1, 1]} : vector<2x384xf32> to vector<2x128xf32>
    %101 = vector.extract_strided_slice %98 {offsets = [0, 256], sizes = [2, 128], strides = [1, 1]} : vector<2x384xf32> to vector<2x128xf32>
    %102 = vector.extract_strided_slice %92 {offsets = [0, 384], sizes = [2, 128], strides = [1, 1]} : vector<2x512xf32> to vector<2x128xf32>
    %103 = math.tanh %102 : vector<2x128xf32>
    %104 = arith.mulf %100, %85 : vector<2x128xf32>
    %105 = arith.mulf %99, %103 : vector<2x128xf32>
    %106 = arith.addf %104, %105 : vector<2x128xf32>
    %107 = math.tanh %106 : vector<2x128xf32>
    %108 = arith.mulf %101, %107 : vector<2x128xf32>
    %c5 = arith.constant 5 : index
    %c0_31 = arith.constant 0 : index
    %c0_32 = arith.constant 0 : index
    %109 = vector.load %arg8[%c5, %c0_31, %c0_32] : memref<8x2x512xf32, #tpu.memory_space<vmem>>, vector<1x2x512xf32>
    %110 = vector.shape_cast %109 : vector<1x2x512xf32> to vector<2x512xf32>
    %111 = arith.truncf %108 : vector<2x128xf32> to vector<2x128xbf16>
    %cst_33 = arith.constant dense<0.000000e+00> : vector<2x512xf32>
    %112 = tpu.matmul %111, %9, %cst_33 {dimension_numbers = #tpu.dot_dimension_numbers<[1], [0], [0], [1], [0, 0, 1, 1], [], []>} : vector<2x128xbf16>, vector<128x512xbf16>, vector<2x512xf32> -> vector<2x512xf32>
    %113 = arith.addf %110, %112 : vector<2x512xf32>
    %114 = vector.extract_strided_slice %113 {offsets = [0, 0], sizes = [2, 384], strides = [1, 1]} : vector<2x512xf32> to vector<2x384xf32>
    %115 = arith.negf %114 : vector<2x384xf32>
    %116 = math.exp %115 : vector<2x384xf32>
    %cst_34 = arith.constant 1.000000e+00 : f32
    %117 = vector.broadcast %cst_34 : f32 to vector<2x384xf32>
    %118 = arith.addf %117, %116 : vector<2x384xf32>
    %119 = arith.divf %117, %118 : vector<2x384xf32>
    %120 = vector.extract_strided_slice %119 {offsets = [0, 0], sizes = [2, 128], strides = [1, 1]} : vector<2x384xf32> to vector<2x128xf32>
    %121 = vector.extract_strided_slice %119 {offsets = [0, 128], sizes = [2, 128], strides = [1, 1]} : vector<2x384xf32> to vector<2x128xf32>
    %122 = vector.extract_strided_slice %119 {offsets = [0, 256], sizes = [2, 128], strides = [1, 1]} : vector<2x384xf32> to vector<2x128xf32>
    %123 = vector.extract_strided_slice %113 {offsets = [0, 384], sizes = [2, 128], strides = [1, 1]} : vector<2x512xf32> to vector<2x128xf32>
    %124 = math.tanh %123 : vector<2x128xf32>
    %125 = arith.mulf %121, %106 : vector<2x128xf32>
    %126 = arith.mulf %120, %124 : vector<2x128xf32>
    %127 = arith.addf %125, %126 : vector<2x128xf32>
    %128 = math.tanh %127 : vector<2x128xf32>
    %129 = arith.mulf %122, %128 : vector<2x128xf32>
    %c6 = arith.constant 6 : index
    %c0_35 = arith.constant 0 : index
    %c0_36 = arith.constant 0 : index
    %130 = vector.load %arg8[%c6, %c0_35, %c0_36] : memref<8x2x512xf32, #tpu.memory_space<vmem>>, vector<1x2x512xf32>
    %131 = vector.shape_cast %130 : vector<1x2x512xf32> to vector<2x512xf32>
    %132 = arith.truncf %129 : vector<2x128xf32> to vector<2x128xbf16>
    %cst_37 = arith.constant dense<0.000000e+00> : vector<2x512xf32>
    %133 = tpu.matmul %132, %9, %cst_37 {dimension_numbers = #tpu.dot_dimension_numbers<[1], [0], [0], [1], [0, 0, 1, 1], [], []>} : vector<2x128xbf16>, vector<128x512xbf16>, vector<2x512xf32> -> vector<2x512xf32>
    %134 = arith.addf %131, %133 : vector<2x512xf32>
    %135 = vector.extract_strided_slice %134 {offsets = [0, 0], sizes = [2, 384], strides = [1, 1]} : vector<2x512xf32> to vector<2x384xf32>
    %136 = arith.negf %135 : vector<2x384xf32>
    %137 = math.exp %136 : vector<2x384xf32>
    %cst_38 = arith.constant 1.000000e+00 : f32
    %138 = vector.broadcast %cst_38 : f32 to vector<2x384xf32>
    %139 = arith.addf %138, %137 : vector<2x384xf32>
    %140 = arith.divf %138, %139 : vector<2x384xf32>
    %141 = vector.extract_strided_slice %140 {offsets = [0, 0], sizes = [2, 128], strides = [1, 1]} : vector<2x384xf32> to vector<2x128xf32>
    %142 = vector.extract_strided_slice %140 {offsets = [0, 128], sizes = [2, 128], strides = [1, 1]} : vector<2x384xf32> to vector<2x128xf32>
    %143 = vector.extract_strided_slice %140 {offsets = [0, 256], sizes = [2, 128], strides = [1, 1]} : vector<2x384xf32> to vector<2x128xf32>
    %144 = vector.extract_strided_slice %134 {offsets = [0, 384], sizes = [2, 128], strides = [1, 1]} : vector<2x512xf32> to vector<2x128xf32>
    %145 = math.tanh %144 : vector<2x128xf32>
    %146 = arith.mulf %142, %127 : vector<2x128xf32>
    %147 = arith.mulf %141, %145 : vector<2x128xf32>
    %148 = arith.addf %146, %147 : vector<2x128xf32>
    %149 = math.tanh %148 : vector<2x128xf32>
    %150 = arith.mulf %143, %149 : vector<2x128xf32>
    %c7 = arith.constant 7 : index
    %c0_39 = arith.constant 0 : index
    %c0_40 = arith.constant 0 : index
    %151 = vector.load %arg8[%c7, %c0_39, %c0_40] : memref<8x2x512xf32, #tpu.memory_space<vmem>>, vector<1x2x512xf32>
    %152 = vector.shape_cast %151 : vector<1x2x512xf32> to vector<2x512xf32>
    %153 = arith.truncf %150 : vector<2x128xf32> to vector<2x128xbf16>
    %cst_41 = arith.constant dense<0.000000e+00> : vector<2x512xf32>
    %154 = tpu.matmul %153, %9, %cst_41 {dimension_numbers = #tpu.dot_dimension_numbers<[1], [0], [0], [1], [0, 0, 1, 1], [], []>} : vector<2x128xbf16>, vector<128x512xbf16>, vector<2x512xf32> -> vector<2x512xf32>
    %155 = arith.addf %152, %154 : vector<2x512xf32>
    %156 = vector.extract_strided_slice %155 {offsets = [0, 0], sizes = [2, 384], strides = [1, 1]} : vector<2x512xf32> to vector<2x384xf32>
    %157 = arith.negf %156 : vector<2x384xf32>
    %158 = math.exp %157 : vector<2x384xf32>
    %cst_42 = arith.constant 1.000000e+00 : f32
    %159 = vector.broadcast %cst_42 : f32 to vector<2x384xf32>
    %160 = arith.addf %159, %158 : vector<2x384xf32>
    %161 = arith.divf %159, %160 : vector<2x384xf32>
    %162 = vector.extract_strided_slice %161 {offsets = [0, 0], sizes = [2, 128], strides = [1, 1]} : vector<2x384xf32> to vector<2x128xf32>
    %163 = vector.extract_strided_slice %161 {offsets = [0, 128], sizes = [2, 128], strides = [1, 1]} : vector<2x384xf32> to vector<2x128xf32>
    %164 = vector.extract_strided_slice %161 {offsets = [0, 256], sizes = [2, 128], strides = [1, 1]} : vector<2x384xf32> to vector<2x128xf32>
    %165 = vector.extract_strided_slice %155 {offsets = [0, 384], sizes = [2, 128], strides = [1, 1]} : vector<2x512xf32> to vector<2x128xf32>
    %166 = math.tanh %165 : vector<2x128xf32>
    %167 = arith.mulf %163, %148 : vector<2x128xf32>
    %168 = arith.mulf %162, %166 : vector<2x128xf32>
    %169 = arith.addf %167, %168 : vector<2x128xf32>
    %170 = math.tanh %169 : vector<2x128xf32>
    %171 = arith.mulf %164, %170 : vector<2x128xf32>
    %c0_43 = arith.constant 0 : index
    %c0_44 = arith.constant 0 : index
    %172 = vector.load %arg5[%c0_43, %c0_44] : memref<1x128xf32, #tpu.memory_space<vmem>>, vector<1x128xf32>
    %173 = vector.broadcast %172 : vector<1x128xf32> to vector<2x128xf32>
    %174 = arith.mulf %171, %173 : vector<2x128xf32>
    %cst_45 = arith.constant dense<0.000000e+00> : vector<2xf32>
    %175 = vector.multi_reduction <add>, %174, %cst_45 [1] : vector<2x128xf32> to vector<2xf32>
    %176 = vector.shape_cast %175 : vector<2xf32> to vector<2x1xf32>
    %c0_46 = arith.constant 0 : index
    %c0_47 = arith.constant 0 : index
    %177 = vector.load %arg6[%c0_46, %c0_47] : memref<1x1xf32, #tpu.memory_space<vmem>>, vector<1x1xf32>
    %178 = vector.broadcast %177 : vector<1x1xf32> to vector<2x1xf32>
    %179 = arith.addf %176, %178 : vector<2x1xf32>
    %c0_48 = arith.constant 0 : index
    %c0_49 = arith.constant 0 : index
    %180 = vector.load %arg7[%c0_48, %c0_49] : memref<2x1xf32, #tpu.memory_space<vmem>>, vector<2x1xf32>
    tpu.vector_store %arg7[%c0_48, %c0_49], %179 {strides = array<i32>} : memref<2x1xf32, #tpu.memory_space<vmem>>, vector<2x1xf32>,
    return
  }
  func.func @transform_0(%arg0: i32) -> (i32, i32, i32) {
    %c0_i32 = arith.constant 0 : i32
    %c0_i32_0 = arith.constant 0 : i32
    %c0_i32_1 = arith.constant 0 : i32
    return %c0_i32, %arg0, %c0_i32_0 : i32, i32, i32
  }
  func.func @transform_1(%arg0: i32) -> (i32, i32) {
    %c0_i32 = arith.constant 0 : i32
    %c0_i32_0 = arith.constant 0 : i32
    %c0_i32_1 = arith.constant 0 : i32
    return %c0_i32, %c0_i32_0 : i32, i32
  }
  func.func @transform_2(%arg0: i32) -> (i32, i32) {
    %c0_i32 = arith.constant 0 : i32
    %c0_i32_0 = arith.constant 0 : i32
    %c0_i32_1 = arith.constant 0 : i32
    return %c0_i32, %c0_i32_0 : i32, i32
  }
  func.func @transform_3(%arg0: i32) -> (i32, i32) {
    %c0_i32 = arith.constant 0 : i32
    %c0_i32_0 = arith.constant 0 : i32
    %c0_i32_1 = arith.constant 0 : i32
    return %c0_i32, %c0_i32_0 : i32, i32
  }
  func.func @transform_4(%arg0: i32) -> (i32, i32) {
    %c0_i32 = arith.constant 0 : i32
    %c0_i32_0 = arith.constant 0 : i32
    %c0_i32_1 = arith.constant 0 : i32
    return %c0_i32, %c0_i32_0 : i32, i32
  }
  func.func @transform_5(%arg0: i32) -> (i32, i32) {
    %c0_i32 = arith.constant 0 : i32
    %c0_i32_0 = arith.constant 0 : i32
    %c0_i32_1 = arith.constant 0 : i32
    return %c0_i32, %c0_i32_0 : i32, i32
  }
  func.func @transform_6(%arg0: i32) -> (i32, i32) {
    %c0_i32 = arith.constant 0 : i32
    %c0_i32_0 = arith.constant 0 : i32
    return %arg0, %c0_i32 : i32, i32
  }
}

</mosaic_0001>

<bundles_post_ra>
// kernel: tpu_custom_call.1
= control target key start
LH: loop header
LB: loop body
LE: loop exit
PB: predicated region body
PF: predicated region fallthrough
CT: control target
= control target key end

     0   :  { %s2178_s0 = inlined_call_operand.vmem [shape: bf16[8,2,6], index: 0, kind: input, shape index: {}]   ;;  %s2179_s1 = inlined_call_operand.vmem [shape: bf16[6,512], index: 1, kind: input, shape index: {}]   ;;  %s2180_s2 = inlined_call_operand.hbm [shape: bf16[128,512], index: 2, kind: input, shape index: {}]   ;;  %s2181_s3 = inlined_call_operand.vmem [shape: f32[1,512], index: 3, kind: input, shape index: {}]   ;;  %s2182_s4 = inlined_call_operand.vmem [shape: f32[1,128], index: 4, kind: input, shape index: {}]   ;;  %s2183_s5 = inlined_call_operand.<no memory space> [shape: f32[1,1], index: 5, kind: input, shape index: {}]   ;;  %s2184_s6 = inlined_call_operand.vmem [shape: f32[2,1], index: 6, kind: output, shape index: {}]  }
   0x1   :  { %v11_v0 = vstv %s2183_s5 }
   0x2   :  { %12 = vst [vmem:[#allocation3] sm:$0x1] %v11_v0 }
   0x3   :  { %13 = vsyncpa [#allocation5], 0  ;;  %s1666_s23 = smov [#allocation4]   ;;  %s1642_s27 = scalar_lea.hbm %s2180_s2, 4096 }
   0x4   :  { %s23_s24 = sshll.u32 %s1666_s23, 4  ;;  %p1643_p0 = scmp.ne.s32.totalorder %s2180_s2, %s1642_s27  ;;  %s24_s24 = int_to_ptr.vmem [resolvable:$true] %s23_s24 }
   0x5   :  { %p1646_p1 = scmp.lt.u32.totalorder %s1642_s27, %s2180_s2 }
   0x7   :  { %p1648_p2 = pnand %p1646_p1, %p1643_p0 }
   0x9   :  { %1651 = shalt.err (!%p1648_p2)
}
   0xa   :  { %s1652_s5 = scalar_lea.vmem %s24_s24, 4096  ;;  %p1657_p4 = scmp.lt.s32.totalorder %s24_s24, %s24_s24 }
   0xb   :  { %p1653_p3 = scmp.ne.s32.totalorder %s24_s24, %s1652_s5  ;;  %p1658_p5 = scmp.lt.s32.totalorder %s1652_s5, %s1652_s5 }
   0xd   :  { %p1659_p6 = por %p1658_p5, %p1657_p4 }
   0xf   :  { %p1660_p7 = pnand %p1659_p6, %p1653_p3 }
  0x11   :  { %1663 = shalt.err (!%p1660_p7)
}
  0x12   :  { %s1667_s8 = smov 256   ;;  %s1668_s9 = smov 16  }
  0x13   :  { %29 = dma.hbm_to_vmem [thread:$0]  %s2180_s2, 4096, %s24_s24, [#allocation5], %s1667_s8, %s1667_s8, %s1668_s9  }
  0x14   :  { %1664 = dma.done.wait [#allocation5], 4096  }
  0x15   :  { %1665 = vsyncadd [#allocation5], 4294963200  ;;  %v52_v1 = vlaneseq  ;;  %v1669_v2 = vmov 0   ;;  %v1670_v3 = vmov 1966171168   ;;  %vm143_vm0 = vcmask 1042432  }
  0x16   :  { %188 = vmatprep.mubr.bf16.mxu0 %v1669_v2  ;;  %231 = vmatprep.mubr.bf16.mxu1 %v1669_v2  ;;  %v85_v4 = vunpack.c.l.s4 %v1670_v3  ;;  %v48_v7 = vld [vmem:[%s2179_s1] sm:$0x77]  ;;  %v49_v8 = vld [vmem:[%s2179_s1 + $0x8] sm:$0x77]  ;;  %v43_v17 = vld [vmem:[%s2178_s0 + $0x3] sm:$0x1] }
  0x17   :  { %v1724_v5 = vshrl.u32 %v52_v1, 7  ;;  %v40_v9 = vld [vmem:[%s2178_s0] sm:$0x1]  ;;  %v1471_v11 = vcombine.high %v48_v7, %v48_v7  ;;  %v1473_v12 = vcombine.high %v49_v8, %v49_v8  ;;  %v1470_v13 = vcombine.low %v48_v7, %v48_v7  ;;  %v41_v15 = vld [vmem:[%s2178_s0 + $0x1] sm:$0x1] }
  0x18   :  { %v86_v6 = vunpack.c.0.s8 %v85_v4  ;;  %v1472_v14 = vcombine.low %v49_v8, %v49_v8  ;;  %v42_v16 = vld [vmem:[%s2178_s0 + $0x2] sm:$0x1]  ;;  %v44_v18 = vld [vmem:[%s2178_s0 + $0x4] sm:$0x1]  ;;  %v45_v19 = vld [vmem:[%s2178_s0 + $0x5] sm:$0x1]  ;;  %v80_v21 = vcombine.low %v40_v9, %v41_v15 }
  0x19   :  { %v46_v20 = vld [vmem:[%s2178_s0 + $0x6] sm:$0x1]  ;;  %v81_v22 = vcombine.low %v42_v16, %v43_v17  ;;  %1474 = vmatprep.subr.msk.bf16.mxu0 %vm143_vm0, %v1471_v11  ;;  %1476 = vmatprep.subr.msk.bf16.mxu1 %vm143_vm0, %v1473_v12  ;;  %v145_v23 = vsel %vm143_vm0, %v1470_v13, 0  ;;  %v47_v25 = vld [vmem:[%s2178_s0 + $0x7] sm:$0x1]  ;;  %v82_v26 = vcombine.low %v44_v18, %v45_v19  ;;  %vm139_vm1 = vcmask 48128  }
  0x1a   :  { %v89_v10 = vsub.s32 %v86_v6, %v1724_v5  ;;  %v151_v24 = vsel %vm143_vm0, %v1472_v14, 0  ;;  %157 = vmatpush1.bf16.msra.mxu0 %v145_v23  ;;  %v83_v27 = vcombine.low %v46_v20, %v47_v25  ;;  %v1763_v37 = vld [vmem:[#allocation4 + $0x4] ss:$16 sps:$4 sm:$0xff]   ;;  %v1765_v38 = vld [vmem:[#allocation4 + $0xc] ss:$16 sps:$4 sm:$0xff]   ;;  %v54_v7 = vsub.s32 0, %v1724_v5 }
  0x1b   :  { %200 = vmatpush1.bf16.msra.mxu1 %v151_v24  ;;  %v1767_v39 = vld [vmem:[#allocation4] ss:$16 sps:$4 sm:$0xff]   ;;  %v1769_v40 = vld [vmem:[#allocation4 + $0x8] ss:$16 sps:$4 sm:$0xff]   ;;  %550 = vmatprep.subr.bf16.mxu0 %v1763_v37  ;;  %v1775_v41 = vld [vmem:[#allocation4 + $0x24] ss:$16 sps:$4 sm:$0xff]  }
  0x1c   :  { %v90_v28 = vrot.slane %v80_v21, %v89_v10  ;;  %v97_v29 = vrot.slane %v81_v22, %v89_v10  ;;  %v104_v30 = vrot.slane %v82_v26, %v89_v10  ;;  %v111_v31 = vrot.slane %v83_v27, %v89_v10  ;;  %591 = vmatprep.subr.bf16.mxu1 %v1765_v38  ;;  %v1777_v42 = vld [vmem:[#allocation4 + $0x2c] ss:$16 sps:$4 sm:$0xff]   ;;  %v1779_v43 = vld [vmem:[#allocation4 + $0x20] ss:$16 sps:$4 sm:$0xff]   ;;  %v1781_v44 = vld [vmem:[#allocation4 + $0x28] ss:$16 sps:$4 sm:$0xff]  }
  0x1d   :  { %v1787_v45 = vld [vmem:[#allocation4 + $0x44] ss:$16 sps:$4 sm:$0xff]   ;;  %v1789_v46 = vld [vmem:[#allocation4 + $0x4c] ss:$16 sps:$4 sm:$0xff]   ;;  %v1791_v47 = vld [vmem:[#allocation4 + $0x40] ss:$16 sps:$4 sm:$0xff]  }
  0x1e   :  { %v112_v32 = vcombine.low %v90_v28, %v97_v29  ;;  %v113_v33 = vcombine.low %v104_v30, %v111_v31  ;;  %v1793_v48 = vld [vmem:[#allocation4 + $0x48] ss:$16 sps:$4 sm:$0xff]   ;;  %v1799_v49 = vld [vmem:[#allocation4 + $0x64] ss:$16 sps:$4 sm:$0xff]   ;;  %v1801_v50 = vld [vmem:[#allocation4 + $0x6c] ss:$16 sps:$4 sm:$0xff]  }
  0x1f   :  { %v1803_v51 = vld [vmem:[#allocation4 + $0x60] ss:$16 sps:$4 sm:$0xff]   ;;  %v1805_v52 = vld [vmem:[#allocation4 + $0x68] ss:$16 sps:$4 sm:$0xff]   ;;  %v1811_v53 = vld [vmem:[#allocation4 + $0x84] ss:$16 sps:$4 sm:$0xff]  }
  0x20   :  { %v120_v34 = vrot.slane %v112_v32, %v89_v10  ;;  %v127_v35 = vrot.slane %v113_v33, %v89_v10  ;;  %v1813_v54 = vld [vmem:[#allocation4 + $0x8c] ss:$16 sps:$4 sm:$0xff]   ;;  %v1815_v55 = vld [vmem:[#allocation4 + $0x80] ss:$16 sps:$4 sm:$0xff]   ;;  %v1817_v56 = vld [vmem:[#allocation4 + $0x88] ss:$16 sps:$4 sm:$0xff]  }
  0x21   :  { %v1819_v57 = vld [vmem:[#allocation4 + $0xa4] ss:$16 sps:$4 sm:$0xff]   ;;  %v1821_v58 = vld [vmem:[#allocation4 + $0xac] ss:$16 sps:$4 sm:$0xff]   ;;  %v1827_v59 = vld [vmem:[#allocation4 + $0xa0] ss:$16 sps:$4 sm:$0xff]  }
  0x22   :  { %v128_v36 = vcombine.low %v120_v34, %v127_v35  ;;  %v1829_v60 = vld [vmem:[#allocation4 + $0xa8] ss:$16 sps:$4 sm:$0xff]   ;;  %v1833_v61 = vld [vmem:[#allocation4 + $0xc4] ss:$16 sps:$4 sm:$0xff]   ;;  %v1835_v62 = vld [vmem:[#allocation4 + $0xcc] ss:$16 sps:$4 sm:$0xff]  }
  0x23   :  { %v1839_v63 = vld [vmem:[#allocation4 + $0xc0] ss:$16 sps:$4 sm:$0xff]   ;;  %v1841_v0 = vld [vmem:[#allocation4 + $0xc8] ss:$16 sps:$4 sm:$0xff]   ;;  %v1845_v1 = vld [vmem:[#allocation4 + $0xe4] ss:$16 sps:$4 sm:$0xff]  }
  0x24   :  { %1475 = vmatmul.mubr.msk.bf16.vlgmr.msra.gmra.mrb[0].mxu0 %vm139_vm1, %v128_v36  ;;  %1477 = vmatmul.mubr.msk.bf16.vlgmr.msra.gmra.mrb[0].mxu1 %vm139_vm1, %v128_v36  ;;  %v1847_v3 = vld [vmem:[#allocation4 + $0xec] ss:$16 sps:$4 sm:$0xff]   ;;  %v1851_v4 = vld [vmem:[#allocation4 + $0xe0] ss:$16 sps:$4 sm:$0xff]   ;;  %v1853_v6 = vld [vmem:[#allocation4 + $0xe8] ss:$16 sps:$4 sm:$0xff]  }
  0x25   :  { %582 = vmatprep.mubr.bf16.mxu0 %v1669_v2  ;;  %623 = vmatprep.mubr.bf16.mxu1 %v1669_v2  ;;  %v62_v8 = vsub.s32 2, %v1724_v5  ;;  %v1671_v9 = vmov 1983009808   ;;  %v50_v11 = vld [vmem:[%s2181_s3] sm:$0xf]  ;;  %v58_v12 = vsub.s32 1, %v1724_v5 }
  0x26   :  { %551 = vmatpush1.bf16.msra.mxu0 %v1767_v39  ;;  %592 = vmatpush1.bf16.msra.mxu1 %v1769_v40  ;;  %v255_v10 = vunpack.c.l.s4 %v1671_v9  ;;  %v66_v13 = vsub.s32 3, %v1724_v5  ;;  %v55_v14 = vrot.slane %v50_v11, %v54_v7  ;;  %vm1451_vm2 = vcmask 1041408  }
  0x27   :  { %552 = vmatprep.subr.bf16.mxu0 %v1775_v41  ;;  %593 = vmatprep.subr.bf16.mxu1 %v1777_v42  ;;  %v63_v15 = vrot.slane %v50_v11, %v62_v8  ;;  %v59_v17 = vrot.slane %v50_v11, %v58_v12  ;;  %vm1463_vm3 = vcmask 1024  }
  0x28   :  { %v256_v16 = vunpack.c.0.s8 %v255_v10  ;;  %v67_v18 = vrot.slane %v50_v11, %v66_v13 }
  0x2a   :  { %553 = vmatpush1.bf16.msra.mxu0 %v1779_v43  ;;  %594 = vmatpush1.bf16.msra.mxu1 %v1781_v44  ;;  %v1869_v25 = vsub.s32 %v256_v16, %v1724_v5 }
  0x2b   :  { %554 = vmatprep.subr.bf16.mxu0 %v1787_v45  ;;  %595 = vmatprep.subr.bf16.mxu1 %v1789_v46 }
  0x2e   :  { %555 = vmatpush1.bf16.msra.mxu0 %v1791_v47  ;;  %596 = vmatpush1.bf16.msra.mxu1 %v1793_v48 }
  0x2f   :  { %556 = vmatprep.subr.bf16.mxu0 %v1799_v49  ;;  %597 = vmatprep.subr.bf16.mxu1 %v1801_v50 }
  0x32   :  { %557 = vmatpush1.bf16.msra.mxu0 %v1803_v51  ;;  %598 = vmatpush1.bf16.msra.mxu1 %v1805_v52 }
  0x33   :  { %558 = vmatprep.subr.bf16.mxu0 %v1811_v53  ;;  %599 = vmatprep.subr.bf16.mxu1 %v1813_v54 }
  0x36   :  { %559 = vmatpush1.bf16.msra.mxu0 %v1815_v55  ;;  %600 = vmatpush1.bf16.msra.mxu1 %v1817_v56 }
  0x37   :  { %560 = vmatprep.subr.bf16.mxu0 %v1819_v57  ;;  %601 = vmatprep.subr.bf16.mxu1 %v1821_v58 }
  0x3a   :  { %561 = vmatpush1.bf16.msra.mxu0 %v1827_v59  ;;  %602 = vmatpush1.bf16.msra.mxu1 %v1829_v60 }
  0x3b   :  { %562 = vmatprep.subr.bf16.mxu0 %v1833_v61  ;;  %603 = vmatprep.subr.bf16.mxu1 %v1835_v62 }
  0x3e   :  { %563 = vmatpush1.bf16.msra.mxu0 %v1839_v63  ;;  %604 = vmatpush1.bf16.msra.mxu1 %v1841_v0 }
  0x3f   :  { %564 = vmatprep.subr.bf16.mxu0 %v1845_v1  ;;  %605 = vmatprep.subr.bf16.mxu1 %v1847_v3 }
  0x42   :  { %565 = vmatpush1.bf16.msra.mxu0 %v1851_v4  ;;  %606 = vmatpush1.bf16.msra.mxu1 %v1853_v6 }
  0x43   :  { %678 = vmatprep.subr.bf16.mxu0 %v1763_v37  ;;  %719 = vmatprep.subr.bf16.mxu1 %v1765_v38 }
  0xf7   :  { %v190_v19 = vpop.f32.mrb[0].mxu0  ;;  %v233_v20 = vpop.f32.mrb[0].mxu1 }
  0xf8   :  { %v191_v21 = vadd.f32 %v190_v19, %v55_v14  ;;  %v234_v22 = vadd.f32 %v233_v20, %v63_v15  ;;  %v192_v23 = vpop.f32.mrb[1].mxu0  ;;  %v235_v24 = vpop.f32.mrb[1].mxu1 }
  0xf9   :  { %v193_v26 = vadd.f32 %v192_v23, %v59_v17  ;;  %v236_v27 = vadd.f32 %v235_v24, %v67_v18  ;;  %v194_v28 = vpop.f32.mrb[2].mxu0  ;;  %v237_v29 = vpop.f32.mrb[2].mxu1 }
  0xfa   :  { %v195_v30 = vadd.f32 %v194_v28, %v55_v14  ;;  %v238_v31 = vadd.f32 %v237_v29, %v63_v15  ;;  %v196_v32 = vpop.f32.mrb[3].mxu0  ;;  %v239_v33 = vpop.f32.mrb[3].mxu1 }
  0xfb   :  { %v250_v34 = vcombine.low %v191_v21, %v193_v26  ;;  %v251_v35 = vcombine.high %v191_v21, %v193_v26  ;;  %v252_v36 = vcombine.low %v234_v22, %v236_v27  ;;  %v253_v7 = vcombine.high %v234_v22, %v236_v27 }
  0xfc   :  { %v197_v8 = vadd.f32 %v196_v32, %v59_v17  ;;  %v240_v9 = vadd.f32 %v239_v33, %v67_v18 }
  0xfd   :  { %v1872_v10 = vrot.slane %v250_v34, %v1869_v25  ;;  %v1875_v5 = vrot.slane %v251_v35, %v1869_v25  ;;  %v1878_v11 = vrot.slane %v252_v36, %v1869_v25  ;;  %v1881_v12 = vrot.slane %v253_v7, %v1869_v25 }
  0xfe   :  { %v286_v13 = vcombine.low %v195_v30, %v197_v8  ;;  %v287_v14 = vcombine.high %v195_v30, %v197_v8  ;;  %v288_v15 = vcombine.low %v238_v31, %v240_v9  ;;  %v289_v16 = vcombine.high %v238_v31, %v240_v9 }
  0xff   :  { %v282_v17 = vcombine.low %v1872_v10, %v1878_v11  ;;  %v283_v18 = vcombine.high %v1872_v10, %v1878_v11  ;;  %v284_v19 = vcombine.low %v1875_v5, %v1881_v12  ;;  %v285_v20 = vcombine.high %v1875_v5, %v1881_v12 }
 0x100   :  { %v1892_v21 = vrot.slane %v286_v13, %v1869_v25  ;;  %v1895_v22 = vrot.slane %v287_v14, %v1869_v25  ;;  %v1898_v23 = vrot.slane %v288_v15, %v1869_v25  ;;  %v1901_v24 = vrot.slane %v289_v16, %v1869_v25 }
 0x101   :  { %v1478_v26 = vmul.f32 -1.442695, %v282_v17  ;;  %v378_v31 = vrot.slane %v282_v17, 6 }
 0x103   :  { %1578 = vpow2.f32 %v1478_v26 }
 0x104   :  { %1580 = vtanh.f32 %v378_v31 }
 0x10d   :  { %v1579_v32 = vpop.eup %1578 }
 0x10e   :  { %v374_v33 = vadd.f32 1.0, %v1579_v32  ;;  %v1581_v34 = vpop.eup %1580 }
 0x110   :  { %1582 = vrcp.f32 %v374_v33 }
 0x11a   :  { %v1583_v35 = vpop.eup %1582 }
 0x11b   :  { %v1911_v36 = vmul.f32 %v1583_v35, %v1581_v34  ;;  %v384_v7 = vrot.slane %v1583_v35, 4 }
 0x11d   :  { %1584 = vtanh.f32 %v1911_v36 }
 0x127   :  { %v1585_v8 = vpop.eup %1584 }
 0x128   :  { %v386_v9 = vmul.f32 %v1585_v8, %v384_v7 }
 0x12a   :  { %v389_v13 = vpack.c.bf16 %v386_v9, %v386_v9 }
 0x12c   :  { %583 = vmatmul.mubr.bf16.vlgmr.msra.gmra.mrb[4].mxu0 %v389_v13  ;;  %624 = vmatmul.mubr.bf16.vlgmr.msra.gmra.mrb[4].mxu1 %v389_v13 }
 0x12d   :  { %679 = vmatpush1.bf16.msra.mxu0 %v1767_v39  ;;  %720 = vmatpush1.bf16.msra.mxu1 %v1769_v40 }
 0x12e   :  { %680 = vmatprep.subr.bf16.mxu0 %v1775_v41  ;;  %721 = vmatprep.subr.bf16.mxu1 %v1777_v42 }
 0x12f   :  { %710 = vmatprep.mubr.bf16.mxu0 %v1669_v2  ;;  %751 = vmatprep.mubr.bf16.mxu1 %v1669_v2 }
 0x131   :  { %681 = vmatpush1.bf16.msra.mxu0 %v1779_v43  ;;  %722 = vmatpush1.bf16.msra.mxu1 %v1781_v44 }
 0x132   :  { %682 = vmatprep.subr.bf16.mxu0 %v1787_v45  ;;  %723 = vmatprep.subr.bf16.mxu1 %v1789_v46 }
 0x135   :  { %683 = vmatpush1.bf16.msra.mxu0 %v1791_v47  ;;  %724 = vmatpush1.bf16.msra.mxu1 %v1793_v48 }
 0x136   :  { %684 = vmatprep.subr.bf16.mxu0 %v1799_v49  ;;  %725 = vmatprep.subr.bf16.mxu1 %v1801_v50 }
 0x139   :  { %685 = vmatpush1.bf16.msra.mxu0 %v1803_v51  ;;  %726 = vmatpush1.bf16.msra.mxu1 %v1805_v52 }
 0x13a   :  { %686 = vmatprep.subr.bf16.mxu0 %v1811_v53  ;;  %727 = vmatprep.subr.bf16.mxu1 %v1813_v54 }
 0x13d   :  { %687 = vmatpush1.bf16.msra.mxu0 %v1815_v55  ;;  %728 = vmatpush1.bf16.msra.mxu1 %v1817_v56 }
 0x13e   :  { %688 = vmatprep.subr.bf16.mxu0 %v1819_v57  ;;  %729 = vmatprep.subr.bf16.mxu1 %v1821_v58 }
 0x141   :  { %689 = vmatpush1.bf16.msra.mxu0 %v1827_v59  ;;  %730 = vmatpush1.bf16.msra.mxu1 %v1829_v60 }
 0x142   :  { %690 = vmatprep.subr.bf16.mxu0 %v1833_v61  ;;  %731 = vmatprep.subr.bf16.mxu1 %v1835_v62 }
 0x145   :  { %691 = vmatpush1.bf16.msra.mxu0 %v1839_v63  ;;  %732 = vmatpush1.bf16.msra.mxu1 %v1841_v0 }
 0x146   :  { %692 = vmatprep.subr.bf16.mxu0 %v1845_v1  ;;  %733 = vmatprep.subr.bf16.mxu1 %v1847_v3 }
 0x149   :  { %693 = vmatpush1.bf16.msra.mxu0 %v1851_v4  ;;  %734 = vmatpush1.bf16.msra.mxu1 %v1853_v6 }
 0x14a   :  { %806 = vmatprep.subr.bf16.mxu0 %v1763_v37  ;;  %847 = vmatprep.subr.bf16.mxu1 %v1765_v38 }
 0x1ff   :  { %v584_v14 = vpop.f32.mrb[4].mxu0  ;;  %v625_v15 = vpop.f32.mrb[4].mxu1 }
 0x200   :  { %v586_v16 = vpop.f32.mrb[5].mxu0  ;;  %v627_v17 = vpop.f32.mrb[5].mxu1 }
 0x201   :  { %v636_v26 = vcombine.low %v584_v14, %v586_v16  ;;  %v637_v31 = vcombine.low %v625_v15, %v627_v17  ;;  %v588_v32 = vpop.f32.mrb[6].mxu0  ;;  %v629_v33 = vpop.f32.mrb[6].mxu1 }
 0x202   :  { %v589_v34 = vpop.f32.mrb[7].mxu0  ;;  %v630_v35 = vpop.f32.mrb[7].mxu1 }
 0x203   :  { %v644_v7 = vrot.slane %v636_v26, %v1869_v25  ;;  %v651_v8 = vrot.slane %v637_v31, %v1869_v25 }
 0x205   :  { %v652_v9 = vcombine.low %v644_v7, %v651_v8 }
 0x207   :  { %v654_v13 = vadd.f32 %v652_v9, %v283_v18 }
 0x209   :  { %v1511_v30 = vmul.f32 -1.442695, %v654_v13  ;;  %v662_v27 = vrot.slane %v654_v13, 6 }
 0x20b   :  { %1586 = vpow2.f32 %v1511_v30 }
 0x215   :  { %v1587_v29 = vpop.eup %1586 }
 0x216   :  { %v658_v28 = vadd.f32 1.0, %v1587_v29 }
 0x218   :  { %1588 = vrcp.f32 %v658_v28 }
 0x219   :  { %1590 = vtanh.f32 %v662_v27 }
 0x222   :  { %v1589_v14 = vpop.eup %1588 }
 0x223   :  { %v666_v15 = vrot.slane %v1589_v14, 2  ;;  %v1591_v16 = vpop.eup %1590  ;;  %v672_v31 = vrot.slane %v1589_v14, 4 }
 0x224   :  { %v669_v17 = vmul.f32 %v1591_v16, %v1589_v14 }
 0x225   :  { %v668_v26 = vmul.f32 %v666_v15, %v1911_v36 }
 0x227   :  { %v1954_v32 = vadd.f32 %v669_v17, %v668_v26 }
 0x229   :  { %1592 = vtanh.f32 %v1954_v32 }
 0x233   :  { %v1593_v10 = vpop.eup %1592 }
 0x234   :  { %v674_v11 = vmul.f32 %v1593_v10, %v672_v31 }
 0x236   :  { %v677_v18 = vpack.c.bf16 %v674_v11, %v674_v11 }
 0x238   :  { %711 = vmatmul.mubr.bf16.vlgmr.msra.gmra.mrb[8].mxu0 %v677_v18  ;;  %752 = vmatmul.mubr.bf16.vlgmr.msra.gmra.mrb[8].mxu1 %v677_v18 }
 0x239   :  { %807 = vmatpush1.bf16.msra.mxu0 %v1767_v39  ;;  %848 = vmatpush1.bf16.msra.mxu1 %v1769_v40 }
 0x23a   :  { %808 = vmatprep.subr.bf16.mxu0 %v1775_v41  ;;  %849 = vmatprep.subr.bf16.mxu1 %v1777_v42 }
 0x23b   :  { %838 = vmatprep.mubr.bf16.mxu0 %v1669_v2  ;;  %879 = vmatprep.mubr.bf16.mxu1 %v1669_v2 }
 0x23d   :  { %809 = vmatpush1.bf16.msra.mxu0 %v1779_v43  ;;  %850 = vmatpush1.bf16.msra.mxu1 %v1781_v44 }
 0x23e   :  { %810 = vmatprep.subr.bf16.mxu0 %v1787_v45  ;;  %851 = vmatprep.subr.bf16.mxu1 %v1789_v46 }
 0x241   :  { %811 = vmatpush1.bf16.msra.mxu0 %v1791_v47  ;;  %852 = vmatpush1.bf16.msra.mxu1 %v1793_v48 }
 0x242   :  { %812 = vmatprep.subr.bf16.mxu0 %v1799_v49  ;;  %853 = vmatprep.subr.bf16.mxu1 %v1801_v50 }
 0x245   :  { %813 = vmatpush1.bf16.msra.mxu0 %v1803_v51  ;;  %854 = vmatpush1.bf16.msra.mxu1 %v1805_v52 }
 0x246   :  { %814 = vmatprep.subr.bf16.mxu0 %v1811_v53  ;;  %855 = vmatprep.subr.bf16.mxu1 %v1813_v54 }
 0x249   :  { %815 = vmatpush1.bf16.msra.mxu0 %v1815_v55  ;;  %856 = vmatpush1.bf16.msra.mxu1 %v1817_v56 }
 0x24a   :  { %816 = vmatprep.subr.bf16.mxu0 %v1819_v57  ;;  %857 = vmatprep.subr.bf16.mxu1 %v1821_v58 }
 0x24d   :  { %817 = vmatpush1.bf16.msra.mxu0 %v1827_v59  ;;  %858 = vmatpush1.bf16.msra.mxu1 %v1829_v60 }
 0x24e   :  { %818 = vmatprep.subr.bf16.mxu0 %v1833_v61  ;;  %859 = vmatprep.subr.bf16.mxu1 %v1835_v62 }
 0x251   :  { %819 = vmatpush1.bf16.msra.mxu0 %v1839_v63  ;;  %860 = vmatpush1.bf16.msra.mxu1 %v1841_v0 }
 0x252   :  { %820 = vmatprep.subr.bf16.mxu0 %v1845_v1  ;;  %861 = vmatprep.subr.bf16.mxu1 %v1847_v3 }
 0x255   :  { %821 = vmatpush1.bf16.msra.mxu0 %v1851_v4  ;;  %862 = vmatpush1.bf16.msra.mxu1 %v1853_v6 }
 0x256   :  { %934 = vmatprep.subr.bf16.mxu0 %v1763_v37  ;;  %975 = vmatprep.subr.bf16.mxu1 %v1765_v38 }
 0x30b   :  { %v712_v27 = vpop.f32.mrb[8].mxu0  ;;  %v753_v28 = vpop.f32.mrb[8].mxu1 }
 0x30c   :  { %v714_v29 = vpop.f32.mrb[9].mxu0  ;;  %v755_v30 = vpop.f32.mrb[9].mxu1 }
 0x30d   :  { %v764_v36 = vcombine.low %v712_v27, %v714_v29  ;;  %v765_v33 = vcombine.low %v753_v28, %v755_v30  ;;  %v716_v34 = vpop.f32.mrb[10].mxu0  ;;  %v757_v35 = vpop.f32.mrb[10].mxu1 }
 0x30e   :  { %v717_v7 = vpop.f32.mrb[11].mxu0  ;;  %v758_v8 = vpop.f32.mrb[11].mxu1 }
 0x30f   :  { %v772_v9 = vrot.slane %v764_v36, %v1869_v25  ;;  %v779_v13 = vrot.slane %v765_v33, %v1869_v25 }
 0x311   :  { %v780_v14 = vcombine.low %v772_v9, %v779_v13 }
 0x313   :  { %v782_v15 = vadd.f32 %v780_v14, %v284_v19 }
 0x315   :  { %v1512_v16 = vmul.f32 -1.442695, %v782_v15  ;;  %v790_v31 = vrot.slane %v782_v15, 6 }
 0x317   :  { %1594 = vpow2.f32 %v1512_v16 }
 0x321   :  { %v1595_v17 = vpop.eup %1594 }
 0x322   :  { %v786_v26 = vadd.f32 1.0, %v1595_v17 }
 0x324   :  { %1596 = vrcp.f32 %v786_v26 }
 0x325   :  { %1598 = vtanh.f32 %v790_v31 }
 0x32e   :  { %v1597_v10 = vpop.eup %1596 }
 0x32f   :  { %v794_v11 = vrot.slane %v1597_v10, 2  ;;  %v1599_v18 = vpop.eup %1598  ;;  %v800_v30 = vrot.slane %v1597_v10, 4 }
 0x330   :  { %v797_v27 = vmul.f32 %v1599_v18, %v1597_v10 }
 0x331   :  { %v796_v28 = vmul.f32 %v794_v11, %v1954_v32 }
 0x333   :  { %v1997_v29 = vadd.f32 %v797_v27, %v796_v28 }
 0x335   :  { %1600 = vtanh.f32 %v1997_v29 }
 0x33f   :  { %v1601_v36 = vpop.eup %1600 }
 0x340   :  { %v802_v19 = vmul.f32 %v1601_v36, %v800_v30 }
 0x342   :  { %v805_v33 = vpack.c.bf16 %v802_v19, %v802_v19 }
 0x344   :  { %839 = vmatmul.mubr.bf16.vlgmr.msra.gmra.mrb[12].mxu0 %v805_v33  ;;  %880 = vmatmul.mubr.bf16.vlgmr.msra.gmra.mrb[12].mxu1 %v805_v33 }
 0x345   :  { %935 = vmatpush1.bf16.msra.mxu0 %v1767_v39  ;;  %976 = vmatpush1.bf16.msra.mxu1 %v1769_v40 }
 0x346   :  { %936 = vmatprep.subr.bf16.mxu0 %v1775_v41  ;;  %977 = vmatprep.subr.bf16.mxu1 %v1777_v42 }
 0x347   :  { %966 = vmatprep.mubr.bf16.mxu0 %v1669_v2  ;;  %1007 = vmatprep.mubr.bf16.mxu1 %v1669_v2 }
 0x349   :  { %937 = vmatpush1.bf16.msra.mxu0 %v1779_v43  ;;  %978 = vmatpush1.bf16.msra.mxu1 %v1781_v44 }
 0x34a   :  { %938 = vmatprep.subr.bf16.mxu0 %v1787_v45  ;;  %979 = vmatprep.subr.bf16.mxu1 %v1789_v46 }
 0x34d   :  { %939 = vmatpush1.bf16.msra.mxu0 %v1791_v47  ;;  %980 = vmatpush1.bf16.msra.mxu1 %v1793_v48 }
 0x34e   :  { %940 = vmatprep.subr.bf16.mxu0 %v1799_v49  ;;  %981 = vmatprep.subr.bf16.mxu1 %v1801_v50 }
 0x351   :  { %941 = vmatpush1.bf16.msra.mxu0 %v1803_v51  ;;  %982 = vmatpush1.bf16.msra.mxu1 %v1805_v52 }
 0x352   :  { %942 = vmatprep.subr.bf16.mxu0 %v1811_v53  ;;  %983 = vmatprep.subr.bf16.mxu1 %v1813_v54 }
 0x355   :  { %943 = vmatpush1.bf16.msra.mxu0 %v1815_v55  ;;  %984 = vmatpush1.bf16.msra.mxu1 %v1817_v56 }
 0x356   :  { %944 = vmatprep.subr.bf16.mxu0 %v1819_v57  ;;  %985 = vmatprep.subr.bf16.mxu1 %v1821_v58 }
 0x359   :  { %945 = vmatpush1.bf16.msra.mxu0 %v1827_v59  ;;  %986 = vmatpush1.bf16.msra.mxu1 %v1829_v60 }
 0x35a   :  { %946 = vmatprep.subr.bf16.mxu0 %v1833_v61  ;;  %987 = vmatprep.subr.bf16.mxu1 %v1835_v62 }
 0x35d   :  { %947 = vmatpush1.bf16.msra.mxu0 %v1839_v63  ;;  %988 = vmatpush1.bf16.msra.mxu1 %v1841_v0 }
 0x35e   :  { %948 = vmatprep.subr.bf16.mxu0 %v1845_v1  ;;  %989 = vmatprep.subr.bf16.mxu1 %v1847_v3 }
 0x361   :  { %949 = vmatpush1.bf16.msra.mxu0 %v1851_v4  ;;  %990 = vmatpush1.bf16.msra.mxu1 %v1853_v6 }
 0x362   :  { %1062 = vmatprep.subr.bf16.mxu0 %v1763_v37  ;;  %1103 = vmatprep.subr.bf16.mxu1 %v1765_v38 }
 0x417   :  { %v840_v32 = vpop.f32.mrb[12].mxu0  ;;  %v881_v34 = vpop.f32.mrb[12].mxu1 }
 0x418   :  { %v842_v35 = vpop.f32.mrb[13].mxu0  ;;  %v883_v7 = vpop.f32.mrb[13].mxu1 }
 0x419   :  { %v892_v8 = vcombine.low %v840_v32, %v842_v35  ;;  %v893_v9 = vcombine.low %v881_v34, %v883_v7  ;;  %v844_v13 = vpop.f32.mrb[14].mxu0  ;;  %v885_v14 = vpop.f32.mrb[14].mxu1 }
 0x41a   :  { %v845_v15 = vpop.f32.mrb[15].mxu0  ;;  %v886_v16 = vpop.f32.mrb[15].mxu1 }
 0x41b   :  { %v900_v17 = vrot.slane %v892_v8, %v1869_v25  ;;  %v907_v26 = vrot.slane %v893_v9, %v1869_v25 }
 0x41d   :  { %v908_v31 = vcombine.low %v900_v17, %v907_v26 }
 0x41f   :  { %v910_v10 = vadd.f32 %v908_v31, %v285_v20 }
 0x421   :  { %v1513_v11 = vmul.f32 -1.442695, %v910_v10  ;;  %v918_v28 = vrot.slane %v910_v10, 6 }
 0x423   :  { %1602 = vpow2.f32 %v1513_v11 }
 0x42d   :  { %v1603_v18 = vpop.eup %1602 }
 0x42e   :  { %v914_v27 = vadd.f32 1.0, %v1603_v18  ;;  %v2185_v18 = vcombine.low %v1892_v21, %v1898_v23 }
 0x430   :  { %1604 = vrcp.f32 %v914_v27 }
 0x431   :  { %1606 = vtanh.f32 %v918_v28 }
 0x43a   :  { %v1605_v30 = vpop.eup %1604 }
 0x43b   :  { %v922_v36 = vrot.slane %v1605_v30, 2  ;;  %v1607_v19 = vpop.eup %1606  ;;  %v928_v35 = vrot.slane %v1605_v30, 4 }
 0x43c   :  { %v925_v33 = vmul.f32 %v1607_v19, %v1605_v30 }
 0x43d   :  { %v924_v32 = vmul.f32 %v922_v36, %v1997_v29 }
 0x43f   :  { %v2040_v34 = vadd.f32 %v925_v33, %v924_v32 }
 0x441   :  { %1608 = vtanh.f32 %v2040_v34 }
 0x44b   :  { %v1609_v5 = vpop.eup %1608 }
 0x44c   :  { %v930_v12 = vmul.f32 %v1609_v5, %v928_v35 }
 0x44e   :  { %v933_v20 = vpack.c.bf16 %v930_v12, %v930_v12 }
 0x450   :  { %967 = vmatmul.mubr.bf16.vlgmr.msra.gmra.mrb[16].mxu0 %v933_v20  ;;  %1008 = vmatmul.mubr.bf16.vlgmr.msra.gmra.mrb[16].mxu1 %v933_v20 }
 0x451   :  { %1063 = vmatpush1.bf16.msra.mxu0 %v1767_v39  ;;  %1104 = vmatpush1.bf16.msra.mxu1 %v1769_v40 }
 0x452   :  { %1064 = vmatprep.subr.bf16.mxu0 %v1775_v41  ;;  %1105 = vmatprep.subr.bf16.mxu1 %v1777_v42 }
 0x453   :  { %1094 = vmatprep.mubr.bf16.mxu0 %v1669_v2  ;;  %1135 = vmatprep.mubr.bf16.mxu1 %v1669_v2 }
 0x455   :  { %1065 = vmatpush1.bf16.msra.mxu0 %v1779_v43  ;;  %1106 = vmatpush1.bf16.msra.mxu1 %v1781_v44 }
 0x456   :  { %1066 = vmatprep.subr.bf16.mxu0 %v1787_v45  ;;  %1107 = vmatprep.subr.bf16.mxu1 %v1789_v46 }
 0x459   :  { %1067 = vmatpush1.bf16.msra.mxu0 %v1791_v47  ;;  %1108 = vmatpush1.bf16.msra.mxu1 %v1793_v48 }
 0x45a   :  { %1068 = vmatprep.subr.bf16.mxu0 %v1799_v49  ;;  %1109 = vmatprep.subr.bf16.mxu1 %v1801_v50 }
 0x45d   :  { %1069 = vmatpush1.bf16.msra.mxu0 %v1803_v51  ;;  %1110 = vmatpush1.bf16.msra.mxu1 %v1805_v52 }
 0x45e   :  { %1070 = vmatprep.subr.bf16.mxu0 %v1811_v53  ;;  %1111 = vmatprep.subr.bf16.mxu1 %v1813_v54 }
 0x461   :  { %1071 = vmatpush1.bf16.msra.mxu0 %v1815_v55  ;;  %1112 = vmatpush1.bf16.msra.mxu1 %v1817_v56 }
 0x462   :  { %1072 = vmatprep.subr.bf16.mxu0 %v1819_v57  ;;  %1113 = vmatprep.subr.bf16.mxu1 %v1821_v58 }
 0x465   :  { %1073 = vmatpush1.bf16.msra.mxu0 %v1827_v59  ;;  %1114 = vmatpush1.bf16.msra.mxu1 %v1829_v60 }
 0x466   :  { %1074 = vmatprep.subr.bf16.mxu0 %v1833_v61  ;;  %1115 = vmatprep.subr.bf16.mxu1 %v1835_v62 }
 0x469   :  { %1075 = vmatpush1.bf16.msra.mxu0 %v1839_v63  ;;  %1116 = vmatpush1.bf16.msra.mxu1 %v1841_v0 }
 0x46a   :  { %1076 = vmatprep.subr.bf16.mxu0 %v1845_v1  ;;  %1117 = vmatprep.subr.bf16.mxu1 %v1847_v3 }
 0x46d   :  { %1077 = vmatpush1.bf16.msra.mxu0 %v1851_v4  ;;  %1118 = vmatpush1.bf16.msra.mxu1 %v1853_v6 }
 0x46e   :  { %1190 = vmatprep.subr.bf16.mxu0 %v1763_v37  ;;  %1231 = vmatprep.subr.bf16.mxu1 %v1765_v38 }
 0x523   :  { %v968_v29 = vpop.f32.mrb[16].mxu0  ;;  %v1009_v7 = vpop.f32.mrb[16].mxu1 }
 0x524   :  { %v970_v8 = vpop.f32.mrb[17].mxu0  ;;  %v1011_v9 = vpop.f32.mrb[17].mxu1 }
 0x525   :  { %v1020_v13 = vcombine.low %v968_v29, %v970_v8  ;;  %v1021_v14 = vcombine.low %v1009_v7, %v1011_v9  ;;  %v972_v15 = vpop.f32.mrb[18].mxu0  ;;  %v1013_v16 = vpop.f32.mrb[18].mxu1 }
 0x526   :  { %v973_v17 = vpop.f32.mrb[19].mxu0  ;;  %v1014_v26 = vpop.f32.mrb[19].mxu1 }
 0x527   :  { %v1028_v31 = vrot.slane %v1020_v13, %v1869_v25  ;;  %v1035_v10 = vrot.slane %v1021_v14, %v1869_v25 }
 0x529   :  { %v1036_v11 = vcombine.low %v1028_v31, %v1035_v10 }
 0x52b   :  { %v1038_v27 = vadd.f32 %v1036_v11, %v2185_v18 }
 0x52d   :  { %v1514_v28 = vmul.f32 -1.442695, %v1038_v27  ;;  %v1046_v19 = vrot.slane %v1038_v27, 6 }
 0x52f   :  { %1610 = vpow2.f32 %v1514_v28 }
 0x539   :  { %v1611_v30 = vpop.eup %1610 }
 0x53a   :  { %v1042_v36 = vadd.f32 1.0, %v1611_v30 }
 0x53c   :  { %1612 = vrcp.f32 %v1042_v36 }
 0x53d   :  { %1614 = vtanh.f32 %v1046_v19 }
 0x546   :  { %v1613_v33 = vpop.eup %1612 }
 0x547   :  { %v1050_v32 = vrot.slane %v1613_v33, 2  ;;  %v1615_v35 = vpop.eup %1614  ;;  %v1056_v29 = vrot.slane %v1613_v33, 4 }
 0x548   :  { %v1053_v5 = vmul.f32 %v1615_v35, %v1613_v33 }
 0x549   :  { %v1052_v12 = vmul.f32 %v1050_v32, %v2040_v34 }
 0x54b   :  { %v2083_v20 = vadd.f32 %v1053_v5, %v1052_v12 }
 0x54d   :  { %1616 = vtanh.f32 %v2083_v20 }
 0x557   :  { %v1617_v7 = vpop.eup %1616 }
 0x558   :  { %v1058_v8 = vmul.f32 %v1617_v7, %v1056_v29 }
 0x55a   :  { %v1061_v9 = vpack.c.bf16 %v1058_v8, %v1058_v8 }
 0x55c   :  { %1095 = vmatmul.mubr.bf16.vlgmr.msra.gmra.mrb[20].mxu0 %v1061_v9  ;;  %1136 = vmatmul.mubr.bf16.vlgmr.msra.gmra.mrb[20].mxu1 %v1061_v9 }
 0x55d   :  { %1191 = vmatpush1.bf16.msra.mxu0 %v1767_v39  ;;  %1232 = vmatpush1.bf16.msra.mxu1 %v1769_v40 }
 0x55e   :  { %1192 = vmatprep.subr.bf16.mxu0 %v1775_v41  ;;  %1233 = vmatprep.subr.bf16.mxu1 %v1777_v42 }
 0x55f   :  { %1222 = vmatprep.mubr.bf16.mxu0 %v1669_v2  ;;  %1263 = vmatprep.mubr.bf16.mxu1 %v1669_v2 }
 0x561   :  { %1193 = vmatpush1.bf16.msra.mxu0 %v1779_v43  ;;  %1234 = vmatpush1.bf16.msra.mxu1 %v1781_v44 }
 0x562   :  { %1194 = vmatprep.subr.bf16.mxu0 %v1787_v45  ;;  %1235 = vmatprep.subr.bf16.mxu1 %v1789_v46 }
 0x565   :  { %1195 = vmatpush1.bf16.msra.mxu0 %v1791_v47  ;;  %1236 = vmatpush1.bf16.msra.mxu1 %v1793_v48 }
 0x566   :  { %1196 = vmatprep.subr.bf16.mxu0 %v1799_v49  ;;  %1237 = vmatprep.subr.bf16.mxu1 %v1801_v50 }
 0x569   :  { %1197 = vmatpush1.bf16.msra.mxu0 %v1803_v51  ;;  %1238 = vmatpush1.bf16.msra.mxu1 %v1805_v52 }
 0x56a   :  { %1198 = vmatprep.subr.bf16.mxu0 %v1811_v53  ;;  %1239 = vmatprep.subr.bf16.mxu1 %v1813_v54 }
 0x56d   :  { %1199 = vmatpush1.bf16.msra.mxu0 %v1815_v55  ;;  %1240 = vmatpush1.bf16.msra.mxu1 %v1817_v56 }
 0x56e   :  { %1200 = vmatprep.subr.bf16.mxu0 %v1819_v57  ;;  %1241 = vmatprep.subr.bf16.mxu1 %v1821_v58 }
 0x571   :  { %1201 = vmatpush1.bf16.msra.mxu0 %v1827_v59  ;;  %1242 = vmatpush1.bf16.msra.mxu1 %v1829_v60 }
 0x572   :  { %1202 = vmatprep.subr.bf16.mxu0 %v1833_v61  ;;  %1243 = vmatprep.subr.bf16.mxu1 %v1835_v62 }
 0x575   :  { %1203 = vmatpush1.bf16.msra.mxu0 %v1839_v63  ;;  %1244 = vmatpush1.bf16.msra.mxu1 %v1841_v0 }
 0x576   :  { %1204 = vmatprep.subr.bf16.mxu0 %v1845_v1  ;;  %1245 = vmatprep.subr.bf16.mxu1 %v1847_v3 }
 0x579   :  { %1205 = vmatpush1.bf16.msra.mxu0 %v1851_v4  ;;  %1246 = vmatpush1.bf16.msra.mxu1 %v1853_v6 }
 0x57a   :  { %1318 = vmatprep.subr.bf16.mxu0 %v1763_v37  ;;  %1359 = vmatprep.subr.bf16.mxu1 %v1765_v38  ;;  %v2186_v37 = vcombine.high %v1892_v21, %v1898_v23 }
 0x62f   :  { %v1096_v34 = vpop.f32.mrb[20].mxu0  ;;  %v1137_v13 = vpop.f32.mrb[20].mxu1 }
 0x630   :  { %v1098_v14 = vpop.f32.mrb[21].mxu0  ;;  %v1139_v15 = vpop.f32.mrb[21].mxu1 }
 0x631   :  { %v1148_v16 = vcombine.low %v1096_v34, %v1098_v14  ;;  %v1149_v17 = vcombine.low %v1137_v13, %v1139_v15  ;;  %v1100_v26 = vpop.f32.mrb[22].mxu0  ;;  %v1141_v31 = vpop.f32.mrb[22].mxu1 }
 0x632   :  { %v1101_v10 = vpop.f32.mrb[23].mxu0  ;;  %v1142_v11 = vpop.f32.mrb[23].mxu1 }
 0x633   :  { %v1156_v18 = vrot.slane %v1148_v16, %v1869_v25  ;;  %v1163_v27 = vrot.slane %v1149_v17, %v1869_v25 }
 0x635   :  { %v1164_v28 = vcombine.low %v1156_v18, %v1163_v27  ;;  %v2188_v18 = vcombine.high %v1895_v22, %v1901_v24 }
 0x637   :  { %v1166_v30 = vadd.f32 %v1164_v28, %v2186_v37 }
 0x639   :  { %v1515_v38 = vmul.f32 -1.442695, %v1166_v30  ;;  %v1174_v33 = vrot.slane %v1166_v30, 6 }
 0x63b   :  { %1618 = vpow2.f32 %v1515_v38 }
 0x645   :  { %v1619_v36 = vpop.eup %1618 }
 0x646   :  { %v1170_v19 = vadd.f32 1.0, %v1619_v36 }
 0x648   :  { %1620 = vrcp.f32 %v1170_v19 }
 0x649   :  { %1622 = vtanh.f32 %v1174_v33 }
 0x652   :  { %v1621_v32 = vpop.eup %1620 }
 0x653   :  { %v1178_v35 = vrot.slane %v1621_v32, 2  ;;  %v1623_v5 = vpop.eup %1622  ;;  %v1184_v8 = vrot.slane %v1621_v32, 4 }
 0x654   :  { %v1181_v12 = vmul.f32 %v1623_v5, %v1621_v32 }
 0x655   :  { %v1180_v29 = vmul.f32 %v1178_v35, %v2083_v20 }
 0x657   :  { %v2126_v7 = vadd.f32 %v1181_v12, %v1180_v29 }
 0x659   :  { %1624 = vtanh.f32 %v2126_v7 }
 0x663   :  { %v1625_v21 = vpop.eup %1624 }
 0x664   :  { %v1186_v23 = vmul.f32 %v1625_v21, %v1184_v8  ;;  %v1519_v8 = vld [vmem:[#allocation3] ss:$0 sm:$0xff] }
 0x666   :  { %v1189_v9 = vpack.c.bf16 %v1186_v23, %v1186_v23 }
 0x668   :  { %1223 = vmatmul.mubr.bf16.vlgmr.msra.gmra.mrb[24].mxu0 %v1189_v9  ;;  %1264 = vmatmul.mubr.bf16.vlgmr.msra.gmra.mrb[24].mxu1 %v1189_v9 }
 0x669   :  { %1319 = vmatpush1.bf16.msra.mxu0 %v1767_v39  ;;  %1360 = vmatpush1.bf16.msra.mxu1 %v1769_v40 }
 0x66a   :  { %1320 = vmatprep.subr.bf16.mxu0 %v1775_v41  ;;  %1361 = vmatprep.subr.bf16.mxu1 %v1777_v42 }
 0x66b   :  { %1350 = vmatprep.mubr.bf16.mxu0 %v1669_v2  ;;  %1391 = vmatprep.mubr.bf16.mxu1 %v1669_v2 }
 0x66d   :  { %1321 = vmatpush1.bf16.msra.mxu0 %v1779_v43  ;;  %1362 = vmatpush1.bf16.msra.mxu1 %v1781_v44 }
 0x66e   :  { %1322 = vmatprep.subr.bf16.mxu0 %v1787_v45  ;;  %1363 = vmatprep.subr.bf16.mxu1 %v1789_v46 }
 0x671   :  { %1323 = vmatpush1.bf16.msra.mxu0 %v1791_v47  ;;  %1364 = vmatpush1.bf16.msra.mxu1 %v1793_v48 }
 0x672   :  { %1324 = vmatprep.subr.bf16.mxu0 %v1799_v49  ;;  %1365 = vmatprep.subr.bf16.mxu1 %v1801_v50 }
 0x675   :  { %1325 = vmatpush1.bf16.msra.mxu0 %v1803_v51  ;;  %1366 = vmatpush1.bf16.msra.mxu1 %v1805_v52  ;;  %v2187_v51 = vcombine.low %v1895_v22, %v1901_v24  ;;  %v1518_v22 = vld [vmem:[%s2182_s4] ss:$0 sm:$0xff] }
 0x676   :  { %1326 = vmatprep.subr.bf16.mxu0 %v1811_v53  ;;  %1367 = vmatprep.subr.bf16.mxu1 %v1813_v54 }
 0x679   :  { %1327 = vmatpush1.bf16.msra.mxu0 %v1815_v55  ;;  %1368 = vmatpush1.bf16.msra.mxu1 %v1817_v56 }
 0x67a   :  { %1328 = vmatprep.subr.bf16.mxu0 %v1819_v57  ;;  %1369 = vmatprep.subr.bf16.mxu1 %v1821_v58 }
 0x67d   :  { %1329 = vmatpush1.bf16.msra.mxu0 %v1827_v59  ;;  %1370 = vmatpush1.bf16.msra.mxu1 %v1829_v60 }
 0x67e   :  { %1330 = vmatprep.subr.bf16.mxu0 %v1833_v61  ;;  %1371 = vmatprep.subr.bf16.mxu1 %v1835_v62 }
 0x681   :  { %1331 = vmatpush1.bf16.msra.mxu0 %v1839_v63  ;;  %1372 = vmatpush1.bf16.msra.mxu1 %v1841_v0 }
 0x682   :  { %1332 = vmatprep.subr.bf16.mxu0 %v1845_v1  ;;  %1373 = vmatprep.subr.bf16.mxu1 %v1847_v3 }
 0x685   :  { %1333 = vmatpush1.bf16.msra.mxu0 %v1851_v4  ;;  %1374 = vmatpush1.bf16.msra.mxu1 %v1853_v6 }
 0x73b   :  { %v1224_v2 = vpop.f32.mrb[24].mxu0  ;;  %v1265_v39 = vpop.f32.mrb[24].mxu1 }
 0x73c   :  { %v1226_v40 = vpop.f32.mrb[25].mxu0  ;;  %v1267_v41 = vpop.f32.mrb[25].mxu1 }
 0x73d   :  { %v1276_v42 = vcombine.low %v1224_v2, %v1226_v40  ;;  %v1277_v43 = vcombine.low %v1265_v39, %v1267_v41  ;;  %v1228_v44 = vpop.f32.mrb[26].mxu0  ;;  %v1269_v45 = vpop.f32.mrb[26].mxu1 }
 0x73e   :  { %v1229_v46 = vpop.f32.mrb[27].mxu0  ;;  %v1270_v47 = vpop.f32.mrb[27].mxu1 }
 0x73f   :  { %v1284_v48 = vrot.slane %v1276_v42, %v1869_v25  ;;  %v1291_v49 = vrot.slane %v1277_v43, %v1869_v25 }
 0x741   :  { %v1292_v50 = vcombine.low %v1284_v48, %v1291_v49 }
 0x743   :  { %v1294_v52 = vadd.f32 %v1292_v50, %v2187_v51 }
 0x745   :  { %v1516_v53 = vmul.f32 -1.442695, %v1294_v52  ;;  %v1302_v56 = vrot.slane %v1294_v52, 6 }
 0x747   :  { %1626 = vpow2.f32 %v1516_v53 }
 0x751   :  { %v1627_v54 = vpop.eup %1626 }
 0x752   :  { %v1298_v55 = vadd.f32 1.0, %v1627_v54 }
 0x754   :  { %1628 = vrcp.f32 %v1298_v55 }
 0x755   :  { %1630 = vtanh.f32 %v1302_v56 }
 0x75e   :  { %v1629_v57 = vpop.eup %1628 }
 0x75f   :  { %v1306_v58 = vrot.slane %v1629_v57, 2  ;;  %v1631_v59 = vpop.eup %1630  ;;  %v1312_v63 = vrot.slane %v1629_v57, 4 }
 0x760   :  { %v1309_v60 = vmul.f32 %v1631_v59, %v1629_v57 }
 0x761   :  { %v1308_v61 = vmul.f32 %v1306_v58, %v2126_v7 }
 0x763   :  { %v1310_v62 = vadd.f32 %v1309_v60, %v1308_v61 }
 0x765   :  { %1632 = vtanh.f32 %v1310_v62 }
 0x76f   :  { %v1633_v0 = vpop.eup %1632 }
 0x770   :  { %v1314_v1 = vmul.f32 %v1633_v0, %v1312_v63 }
 0x772   :  { %v1317_v3 = vpack.c.bf16 %v1314_v1, %v1314_v1 }
 0x774   :  { %1351 = vmatmul.mubr.bf16.vlgmr.msra.gmra.mrb[28].mxu0 %v1317_v3  ;;  %1392 = vmatmul.mubr.bf16.vlgmr.msra.gmra.mrb[28].mxu1 %v1317_v3 }
 0x847   :  { %v1352_v4 = vpop.f32.mrb[28].mxu0  ;;  %v1393_v6 = vpop.f32.mrb[28].mxu1 }
 0x848   :  { %v1354_v20 = vpop.f32.mrb[29].mxu0  ;;  %v1395_v34 = vpop.f32.mrb[29].mxu1 }
 0x849   :  { %v1404_v13 = vcombine.low %v1352_v4, %v1354_v20  ;;  %v1405_v14 = vcombine.low %v1393_v6, %v1395_v34  ;;  %v1356_v15 = vpop.f32.mrb[30].mxu0  ;;  %v1397_v16 = vpop.f32.mrb[30].mxu1 }
 0x84a   :  { %v1357_v17 = vpop.f32.mrb[31].mxu0  ;;  %v1398_v26 = vpop.f32.mrb[31].mxu1 }
 0x84b   :  { %v1412_v31 = vrot.slane %v1404_v13, %v1869_v25  ;;  %v1419_v10 = vrot.slane %v1405_v14, %v1869_v25 }
 0x84d   :  { %v1420_v11 = vcombine.low %v1412_v31, %v1419_v10 }
 0x84f   :  { %v1422_v27 = vadd.f32 %v1420_v11, %v2188_v18 }
 0x851   :  { %v1517_v28 = vmul.f32 -1.442695, %v1422_v27  ;;  %v1430_v38 = vrot.slane %v1422_v27, 6 }
 0x853   :  { %1634 = vpow2.f32 %v1517_v28 }
 0x85d   :  { %v1635_v37 = vpop.eup %1634 }
 0x85e   :  { %v1426_v30 = vadd.f32 1.0, %v1635_v37 }
 0x860   :  { %1636 = vrcp.f32 %v1426_v30 }
 0x861   :  { %1638 = vtanh.f32 %v1430_v38 }
 0x86a   :  { %v1637_v36 = vpop.eup %1636 }
 0x86b   :  { %v1434_v19 = vrot.slane %v1637_v36, 2  ;;  %v1639_v33 = vpop.eup %1638  ;;  %v1440_v25 = vrot.slane %v1637_v36, 4 }
 0x86c   :  { %v1437_v35 = vmul.f32 %v1639_v33, %v1637_v36 }
 0x86d   :  { %v1436_v32 = vmul.f32 %v1434_v19, %v1310_v62 }
 0x86f   :  { %v1438_v5 = vadd.f32 %v1437_v35, %v1436_v32 }
 0x871   :  { %1640 = vtanh.f32 %v1438_v5 }
 0x87b   :  { %v1641_v12 = vpop.eup %1640 }
 0x87c   :  { %v1442_v24 = vmul.f32 %v1641_v12, %v1440_v25 }
 0x87e   :  { %v1450_v29 = vmul.f32 %v1518_v22, %v1442_v24 }
 0x880   :  { %v1452_v7 = vsel %vm1451_vm2, %v1450_v29, 0.0 }
 0x881   :  { %1453 = vadd.xlane.f32.xlu0 %v1452_v7 }
 0x90e   :  { %v1454_v21 = vpop.xlane.xlu0 %1453 }
 0x90f   :  { %v1462_v23 = vadd.f32 %v1519_v8, %v1454_v21 }
 0x911   :  { %1464 = vst.msk [vmem:[%s2184_s6] sm:$0x3] %vm1463_vm3, %v1462_v23 }
 0x912   :  { %1469 = vsyncpa [#allocation5], 1 }

</bundles_post_ra>
